<compile_context>
chip_gen: v7x
topology: tpu7x:2x2x1
jax: 0.10.0
libtpu: 0.0.40
codegen_flags: <defaults>
</compile_context>

<pallas_src>
import numpy as np
import jax
import jax.numpy as jnp
from jax.experimental import pallas as pl
from jax.experimental.pallas import tpu as pltpu

# Length chain implied by fc = Linear(11, 2):
#   L=64 -> conv(k5,p1)=62 -> pool2=31 -> conv(k5,p1)=29 -> pool2=14 -> conv(k6,p1)=11
L_IN = 64
L1 = L_IN + 2 - 5 + 1   # 62
P1 = L1 // 2            # 31
L2 = P1 + 2 - 5 + 1     # 29
P2 = L2 // 2            # 14
L3 = P2 + 2 - 6 + 1     # 11

# Lane-padded widths of the pooled activations (8*31=248 -> 256, 16*14=224 -> 256)
# so every MXU tile and VPU pass is full 128-lane width.
N1 = 256
N2 = 256


# ----------------------------------------------------------------------------- host-side prep
def _conv_toeplitz(w, pad, l_in):
    """w: (C_out, C_in, K).  Returns T of shape (C_in*l_in, C_out*l_out) such that
    flat_out = flat_in @ T equals the zero-padded Conv1d (no bias), channel-major flatten."""
    w = np.asarray(w, np.float32)
    c_out, c_in, k = w.shape
    l_out = l_in + 2 * pad - k + 1
    t = np.zeros((c_in, l_in, c_out, l_out), np.float32)
    for tt in range(l_out):
        for kk in range(k):
            s = tt + kk - pad
            if 0 <= s < l_in:
                t[:, s, :, tt] += w[:, :, kk].T          # (c_in, c_out)
    return t.reshape(c_in * l_in, c_out * l_out)


def _split_pool(t_mat, c_out, l_out):
    """Split Toeplitz columns into even/odd conv positions consumed by MaxPool1d(2) (floor)."""
    l_pool = l_out // 2
    t3 = t_mat.reshape(t_mat.shape[0], c_out, l_out)
    te = t3[:, :, 0:2 * l_pool:2].reshape(t_mat.shape[0], c_out * l_pool)
    to = t3[:, :, 1:2 * l_pool:2].reshape(t_mat.shape[0], c_out * l_pool)
    return te, to, l_pool


def _pad_cols(a, n):
    out = np.zeros((a.shape[0], n), np.float32)
    out[:, :a.shape[1]] = a
    return out


def _pad_rows(a, n):
    out = np.zeros((n, a.shape[1]), np.float32)
    out[:a.shape[0], :] = a
    return out


def prepare_params(raw, use_bf16=True):
    """raw = PyTorch-layout params -> fused, lane-padded dense matrices for the kernel.

    use_bf16=True (default / production): bf16 matmul operands, f32 accumulation.
    """
    w1, b1, w2, b2, w3, b3, fcw, fcb = (np.asarray(a, np.float32) for a in raw)
    md = jnp.bfloat16 if use_bf16 else jnp.float32

    # Layer 1: conv1 Toeplitz, even/odd pool split, each half padded to N1 lanes, fused.
    t1 = _conv_toeplitz(w1, 1, L_IN)                              # (64, 8*62)
    w1e, w1o, p1l = _split_pool(t1, 8, L1)                        # (64, 248) each
    W1 = np.concatenate([_pad_cols(w1e, N1), _pad_cols(w1o, N1)], axis=1)   # (64, 512)
    bias1 = np.zeros((1, N1), np.float32)
    bias1[0, :8 * p1l] = np.repeat(b1, p1l)                       # pad lanes stay exactly 0

    # Layer 2: rows zero-padded to N1 (the padded p1 lanes are exactly 0, so no-op).
    t2 = _pad_rows(_conv_toeplitz(w2, 1, P1), N1)                 # (256, 16*29)
    w2e, w2o, p2l = _split_pool(t2, 16, L2)                       # (256, 224) each
    W2 = np.concatenate([_pad_cols(w2e, N2), _pad_cols(w2o, N2)], axis=1)   # (256, 512)
    bias2 = np.zeros((1, N2), np.float32)
    bias2[0, :16 * p2l] = np.repeat(b2, p2l)

    # Layer 3 conv fused with fc, rows zero-padded to N2; stored transposed (2, 256).
    t3 = _pad_rows(_conv_toeplitz(w3, 1, P2), N2)                 # (256, 11)
    wlast = t3 @ fcw.T                                            # (256, 2)
    blast = np.repeat(b3, L3) @ fcw.T + fcb                       # (2,)

    return (jnp.asarray(W1, md), jnp.asarray(bias1, jnp.float32),
            jnp.asarray(W2, md), jnp.asarray(bias2, jnp.float32),
            jnp.asarray(wlast.T, md),                             # (2, 256)
            jnp.asarray(blast[:, None], jnp.float32))             # (2, 1)


# ----------------------------------------------------------------------------- kernel
def net_kernel(x_ref, w1_ref, b1_ref, w2_ref, b2_ref, wlt_ref, bl_ref, out_ref):
    # Layer 1: single fused even/odd matmul (K=64, N=512); bias added once after the max.
    h1 = jnp.dot(x_ref[...], w1_ref[...], preferred_element_type=jnp.float32)  # (B, 512) f32
    p1 = (jnp.maximum(h1[:, :N1], h1[:, N1:]) + b1_ref[...]).astype(w2_ref.dtype)  # (B, 256)

    # Layer 2: single fused even/odd matmul (K=256, N=512).
    h2 = jnp.dot(p1, w2_ref[...], preferred_element_type=jnp.float32)          # (B, 512) f32
    p2 = (jnp.maximum(h2[:, :N2], h2[:, N2:]) + b2_ref[...]).astype(wlt_ref.dtype)  # (B, 256)

    # Layer 3 conv fused with fc, computed transposed -> (2, B): lane-dense output stores.
    out_ref[...] = jax.lax.dot_general(
        wlt_ref[...], p2, (((1,), (1,)), ((), ())),
        preferred_element_type=jnp.float32) + bl_ref[...]


# ----------------------------------------------------------------------------- wrapper
def _const_spec(arr, single_buffer):
    nd = arr.ndim
    if single_buffer:
        return pl.BlockSpec(arr.shape, lambda i, _nd=nd: (0,) * _nd,
                            pipeline_mode=pl.Buffered(1))
    return pl.BlockSpec(arr.shape, lambda i, _nd=nd: (0,) * _nd)


_SINGLE_BUFFER_CONSTS = None   # probed on first call: True / False


def _run(x2, params, b_eff, grid_n, single_buffer):
    consts = list(params)                 # W1, b1, W2, b2, wlt, bl
    bp = b_eff * grid_n
    flops = 2 * bp * (L_IN * 2 * N1 + N1 * 2 * N2 + N2 * 2)
    bytes_acc = (int(x2.size) * x2.dtype.itemsize
                 + sum(int(c.size) * c.dtype.itemsize for c in consts)
                 + 2 * bp * 4)
    return pl.pallas_call(
        net_kernel,
        out_shape=jax.ShapeDtypeStruct((2, bp), jnp.float32),
        grid=(grid_n,),
        in_specs=[pl.BlockSpec((b_eff, L_IN), lambda i: (i, 0))]
                 + [_const_spec(c, single_buffer) for c in consts],
        out_specs=pl.BlockSpec((2, b_eff), lambda i: (0, i)),
        compiler_params=pltpu.CompilerParams(dimension_semantics=("parallel",)),
        cost_estimate=pl.CostEstimate(flops=flops, transcendentals=0,
                                      bytes_accessed=bytes_acc),
    )(x2, *consts)


def net_forward(x, params, b_tile=1024):
    """x: (B, 1, 64) -> (B, 2) float32.

    b_tile: batch tile (MXU M). 1024-2048 amortizes the ~0.35us/step overhead; VMEM
    footprint at 2048 is still well under the 32 MiB scoped default (and v7x's 64 MiB).
    On v7x, choose b_tile so the grid has >= 2 steps so the "parallel" batch axis
    actually spans both TensorCores.
    """
    global _SINGLE_BUFFER_CONSTS
    W1 = params[0]
    B = x.shape[0]
    x2 = x.reshape(B, L_IN).astype(W1.dtype)          # cast to matmul dtype on the host

    if B <= b_tile:
        # Small-batch fast path: single grid step, batch padded only to a sublane multiple.
        b_eff = max(8, ((B + 7) // 8) * 8)
        grid_n = 1
    else:
        b_eff = ((b_tile + 127) // 128) * 128         # keep output lane tiles full-width
        grid_n = (B + b_eff - 1) // b_eff
    bp = b_eff * grid_n
    if bp != B:
        x2 = jnp.pad(x2, ((0, bp - B), (0, 0)))

    if _SINGLE_BUFFER_CONSTS is None:
        try:
            out_t = _run(x2, params, b_eff, grid_n, single_buffer=True)
            jax.block_until_ready(out_t)
            _SINGLE_BUFFER_CONSTS = True
        except Exception:
            # pipeline_mode=pl.Buffered(1) unsupported here; resident constants stay
            # double-buffered (constant index_map already avoids re-DMA).
            _SINGLE_BUFFER_CONSTS = False
            out_t = _run(x2, params, b_eff, grid_n, single_buffer=False)
    else:
        out_t = _run(x2, params, b_eff, grid_n, single_buffer=_SINGLE_BUFFER_CONSTS)

    return out_t.T[:B]


# ----------------------------------------------------------------------------- init + reference
def init_raw_params(key):
    ks = jax.random.split(key, 8)

    def u(k, shape, fan_in):
        bound = 1.0 / (fan_in ** 0.5)
        return jax.random.uniform(k, shape, jnp.float32, -bound, bound)

    w1 = u(ks[0], (8, 1, 5), 1 * 5);   b1 = u(ks[1], (8,), 1 * 5)
    w2 = u(ks[2], (16, 8, 5), 8 * 5);  b2 = u(ks[3], (16,), 8 * 5)
    w3 = u(ks[4], (1, 16, 6), 16 * 6); b3 = u(ks[5], (1,), 16 * 6)
    fcw = u(ks[6], (2, 11), 11);       fcb = u(ks[7], (2,), 11)
    return w1, b1, w2, b2, w3, b3, fcw, fcb


def reference_forward(x, raw):
    """Pure-JAX mirror of the PyTorch module (PyTorch weight layout), f32."""
    w1, b1, w2, b2, w3, b3, fcw, fcb = raw

    def conv(h, w, b, pad):
        y = jax.lax.conv_general_dilated(h, w, (1,), [(pad, pad)],
                                         dimension_numbers=("NCH", "OIH", "NCH"))
        return y + b[None, :, None]

    def pool(h):
        l = (h.shape[-1] // 2) * 2
        return h[..., :l].reshape(h.shape[0], h.shape[1], l // 2, 2).max(-1)

    h = pool(conv(x, w1, b1, 1))
    h = pool(conv(h, w2, b2, 1))
    h = conv(h, w3, b3, 1)
    flat = h.reshape(h.shape[0], -1)
    return flat @ fcw.T + fcb


if __name__ == "__main__":
    key = jax.random.PRNGKey(0)
    pkey, xkey1, xkey2 = jax.random.split(key, 3)
    raw = init_raw_params(pkey)

    # --- Test 1: production path (bf16 operands, f32 accumulate), small-batch fast path.
    params_bf16 = prepare_params(raw)                       # use_bf16=True default
    B = 4
    x = jax.random.normal(xkey1, (B, 1, L_IN), jnp.float32)
    out = jax.block_until_ready(net_forward(x, params_bf16))
    assert out.shape == (B, 2)
    ref = reference_forward(x, raw)
    assert jnp.allclose(out, ref, rtol=1e-1, atol=1e-1), (out, ref)

    # --- Test 2: exactness + multi-step tiled grid path (f32 operands, tight tolerance).
    params_f32 = prepare_params(raw, use_bf16=False)
    B2 = 300
    x2 = jax.random.normal(xkey2, (B2, 1, L_IN), jnp.float32)
    out2 = jax.block_until_ready(net_forward(x2, params_f32, b_tile=128))   # grid of 3 steps
    assert out2.shape == (B2, 2)
    ref2 = reference_forward(x2, raw)
    assert jnp.allclose(out2, ref2, rtol=1e-4, atol=1e-4), (out2, ref2)

    print("KERNEL_OK")
</pallas_src>

<mosaic_0001>
module attributes {stable_mosaic.version = 11 : i64} {
  func.func @net_kernel(%arg0: i32, %arg1: memref<8x64xbf16, #tpu.memory_space<vmem>>, %arg2: memref<64x512xbf16, #tpu.memory_space<vmem>>, %arg3: memref<1x256xf32, #tpu.memory_space<vmem>>, %arg4: memref<256x512xbf16, #tpu.memory_space<vmem>>, %arg5: memref<1x256xf32, #tpu.memory_space<vmem>>, %arg6: memref<2x256xbf16, #tpu.memory_space<vmem>>, %arg7: memref<2x1xf32, #tpu.memory_space<vmem>>, %arg8: memref<2x8xf32, #tpu.memory_space<vmem>>) attributes {dimension_semantics = [#tpu.dimension_semantics<parallel>], iteration_bounds = array<i64: 1>, scalar_prefetch = 0 : i64, scratch_operands = 0 : i64, tpu.core_type = #tpu.core_type<tc>, window_params = [{transform_indices = @transform_0, window_bounds = array<i64: 8, 64>}, {pipeline_mode = #tpu.pipeline_mode<synchronous>, transform_indices = @transform_1, window_bounds = array<i64: 64, 512>}, {pipeline_mode = #tpu.pipeline_mode<synchronous>, transform_indices = @transform_2, window_bounds = array<i64: 1, 256>}, {pipeline_mode = #tpu.pipeline_mode<synchronous>, transform_indices = @transform_3, window_bounds = array<i64: 256, 512>}, {pipeline_mode = #tpu.pipeline_mode<synchronous>, transform_indices = @transform_4, window_bounds = array<i64: 1, 256>}, {pipeline_mode = #tpu.pipeline_mode<synchronous>, transform_indices = @transform_5, window_bounds = array<i64: 2, 256>}, {pipeline_mode = #tpu.pipeline_mode<synchronous>, transform_indices = @transform_6, window_bounds = array<i64: 2, 1>}, {transform_indices = @transform_7, window_bounds = array<i64: 2, 8>}]} {
    %c0 = arith.constant 0 : index
    %c0_0 = arith.constant 0 : index
    %0 = vector.load %arg1[%c0, %c0_0] : memref<8x64xbf16, #tpu.memory_space<vmem>>, vector<8x64xbf16>
    %c0_1 = arith.constant 0 : index
    %c0_2 = arith.constant 0 : index
    %1 = vector.load %arg2[%c0_1, %c0_2] : memref<64x512xbf16, #tpu.memory_space<vmem>>, vector<64x512xbf16>
    %cst = arith.constant dense<0.000000e+00> : vector<8x512xf32>
    %2 = tpu.matmul %0, %1, %cst {dimension_numbers = #tpu.dot_dimension_numbers<[1], [0], [0], [1], [0, 0, 1, 1], [], []>} : vector<8x64xbf16>, vector<64x512xbf16>, vector<8x512xf32> -> vector<8x512xf32>
    %3 = vector.extract_strided_slice %2 {offsets = [0, 0], sizes = [8, 256], strides = [1, 1]} : vector<8x512xf32> to vector<8x256xf32>
    %4 = vector.extract_strided_slice %2 {offsets = [0, 256], sizes = [8, 256], strides = [1, 1]} : vector<8x512xf32> to vector<8x256xf32>
    %5 = arith.maximumf %3, %4 : vector<8x256xf32>
    %c0_3 = arith.constant 0 : index
    %c0_4 = arith.constant 0 : index
    %6 = vector.load %arg3[%c0_3, %c0_4] : memref<1x256xf32, #tpu.memory_space<vmem>>, vector<1x256xf32>
    %7 = vector.broadcast %6 : vector<1x256xf32> to vector<8x256xf32>
    %8 = arith.addf %5, %7 : vector<8x256xf32>
    %9 = arith.truncf %8 : vector<8x256xf32> to vector<8x256xbf16>
    %c0_5 = arith.constant 0 : index
    %c0_6 = arith.constant 0 : index
    %10 = vector.load %arg4[%c0_5, %c0_6] : memref<256x512xbf16, #tpu.memory_space<vmem>>, vector<256x512xbf16>
    %cst_7 = arith.constant dense<0.000000e+00> : vector<8x512xf32>
    %11 = tpu.matmul %9, %10, %cst_7 {dimension_numbers = #tpu.dot_dimension_numbers<[1], [0], [0], [1], [0, 0, 1, 1], [], []>} : vector<8x256xbf16>, vector<256x512xbf16>, vector<8x512xf32> -> vector<8x512xf32>
    %12 = vector.extract_strided_slice %11 {offsets = [0, 0], sizes = [8, 256], strides = [1, 1]} : vector<8x512xf32> to vector<8x256xf32>
    %13 = vector.extract_strided_slice %11 {offsets = [0, 256], sizes = [8, 256], strides = [1, 1]} : vector<8x512xf32> to vector<8x256xf32>
    %14 = arith.maximumf %12, %13 : vector<8x256xf32>
    %c0_8 = arith.constant 0 : index
    %c0_9 = arith.constant 0 : index
    %15 = vector.load %arg5[%c0_8, %c0_9] : memref<1x256xf32, #tpu.memory_space<vmem>>, vector<1x256xf32>
    %16 = vector.broadcast %15 : vector<1x256xf32> to vector<8x256xf32>
    %17 = arith.addf %14, %16 : vector<8x256xf32>
    %18 = arith.truncf %17 : vector<8x256xf32> to vector<8x256xbf16>
    %c0_10 = arith.constant 0 : index
    %c0_11 = arith.constant 0 : index
    %19 = vector.load %arg6[%c0_10, %c0_11] : memref<2x256xbf16, #tpu.memory_space<vmem>>, vector<2x256xbf16>
    %cst_12 = arith.constant dense<0.000000e+00> : vector<2x8xf32>
    %20 = tpu.matmul %19, %18, %cst_12 {dimension_numbers = #tpu.dot_dimension_numbers<[1], [1], [0], [0], [0, 0, 1, 0], [], []>} : vector<2x256xbf16>, vector<8x256xbf16>, vector<2x8xf32> -> vector<2x8xf32>
    %c0_13 = arith.constant 0 : index
    %c0_14 = arith.constant 0 : index
    %21 = vector.load %arg7[%c0_13, %c0_14] : memref<2x1xf32, #tpu.memory_space<vmem>>, vector<2x1xf32>
    %22 = vector.broadcast %21 : vector<2x1xf32> to vector<2x8xf32>
    %23 = arith.addf %20, %22 : vector<2x8xf32>
    %c0_15 = arith.constant 0 : index
    %c0_16 = arith.constant 0 : index
    %24 = vector.load %arg8[%c0_15, %c0_16] : memref<2x8xf32, #tpu.memory_space<vmem>>, vector<2x8xf32>
    tpu.vector_store %arg8[%c0_15, %c0_16], %23 {strides = array<i32>} : memref<2x8xf32, #tpu.memory_space<vmem>>, vector<2x8xf32>,
    return
  }
  func.func @transform_0(%arg0: i32) -> (i32, i32) {
    %c0_i32 = arith.constant 0 : i32
    %c0_i32_0 = arith.constant 0 : i32
    return %arg0, %c0_i32 : i32, i32
  }
  func.func @transform_1(%arg0: i32) -> (i32, i32) {
    %c0_i32 = arith.constant 0 : i32
    %c0_i32_0 = arith.constant 0 : i32
    %c0_i32_1 = arith.constant 0 : i32
    return %c0_i32, %c0_i32_0 : i32, i32
  }
  func.func @transform_2(%arg0: i32) -> (i32, i32) {
    %c0_i32 = arith.constant 0 : i32
    %c0_i32_0 = arith.constant 0 : i32
    %c0_i32_1 = arith.constant 0 : i32
    return %c0_i32, %c0_i32_0 : i32, i32
  }
  func.func @transform_3(%arg0: i32) -> (i32, i32) {
    %c0_i32 = arith.constant 0 : i32
    %c0_i32_0 = arith.constant 0 : i32
    %c0_i32_1 = arith.constant 0 : i32
    return %c0_i32, %c0_i32_0 : i32, i32
  }
  func.func @transform_4(%arg0: i32) -> (i32, i32) {
    %c0_i32 = arith.constant 0 : i32
    %c0_i32_0 = arith.constant 0 : i32
    %c0_i32_1 = arith.constant 0 : i32
    return %c0_i32, %c0_i32_0 : i32, i32
  }
  func.func @transform_5(%arg0: i32) -> (i32, i32) {
    %c0_i32 = arith.constant 0 : i32
    %c0_i32_0 = arith.constant 0 : i32
    %c0_i32_1 = arith.constant 0 : i32
    return %c0_i32, %c0_i32_0 : i32, i32
  }
  func.func @transform_6(%arg0: i32) -> (i32, i32) {
    %c0_i32 = arith.constant 0 : i32
    %c0_i32_0 = arith.constant 0 : i32
    %c0_i32_1 = arith.constant 0 : i32
    return %c0_i32, %c0_i32_0 : i32, i32
  }
  func.func @transform_7(%arg0: i32) -> (i32, i32) {
    %c0_i32 = arith.constant 0 : i32
    %c0_i32_0 = arith.constant 0 : i32
    return %c0_i32, %arg0 : i32, i32
  }
}

module attributes {stable_mosaic.version = 11 : i64} {
  func.func @net_kernel(%arg0: i32, %arg1: memref<8x64xbf16, #tpu.memory_space<vmem>>, %arg2: memref<64x512xbf16, #tpu.memory_space<vmem>>, %arg3: memref<1x256xf32, #tpu.memory_space<vmem>>, %arg4: memref<256x512xbf16, #tpu.memory_space<vmem>>, %arg5: memref<1x256xf32, #tpu.memory_space<vmem>>, %arg6: memref<2x256xbf16, #tpu.memory_space<vmem>>, %arg7: memref<2x1xf32, #tpu.memory_space<vmem>>, %arg8: memref<2x8xf32, #tpu.memory_space<vmem>>) attributes {dimension_semantics = [#tpu.dimension_semantics<parallel>], iteration_bounds = array<i64: 1>, scalar_prefetch = 0 : i64, scratch_operands = 0 : i64, tpu.core_type = #tpu.core_type<tc>, window_params = [{transform_indices = @transform_0, window_bounds = array<i64: 8, 64>}, {pipeline_mode = #tpu.pipeline_mode<synchronous>, transform_indices = @transform_1, window_bounds = array<i64: 64, 512>}, {pipeline_mode = #tpu.pipeline_mode<synchronous>, transform_indices = @transform_2, window_bounds = array<i64: 1, 256>}, {pipeline_mode = #tpu.pipeline_mode<synchronous>, transform_indices = @transform_3, window_bounds = array<i64: 256, 512>}, {pipeline_mode = #tpu.pipeline_mode<synchronous>, transform_indices = @transform_4, window_bounds = array<i64: 1, 256>}, {pipeline_mode = #tpu.pipeline_mode<synchronous>, transform_indices = @transform_5, window_bounds = array<i64: 2, 256>}, {pipeline_mode = #tpu.pipeline_mode<synchronous>, transform_indices = @transform_6, window_bounds = array<i64: 2, 1>}, {transform_indices = @transform_7, window_bounds = array<i64: 2, 8>}]} {
    %c0 = arith.constant 0 : index
    %c0_0 = arith.constant 0 : index
    %0 = vector.load %arg1[%c0, %c0_0] : memref<8x64xbf16, #tpu.memory_space<vmem>>, vector<8x64xbf16>
    %c0_1 = arith.constant 0 : index
    %c0_2 = arith.constant 0 : index
    %1 = vector.load %arg2[%c0_1, %c0_2] : memref<64x512xbf16, #tpu.memory_space<vmem>>, vector<64x512xbf16>
    %cst = arith.constant dense<0.000000e+00> : vector<8x512xf32>
    %2 = tpu.matmul %0, %1, %cst {dimension_numbers = #tpu.dot_dimension_numbers<[1], [0], [0], [1], [0, 0, 1, 1], [], []>} : vector<8x64xbf16>, vector<64x512xbf16>, vector<8x512xf32> -> vector<8x512xf32>
    %3 = vector.extract_strided_slice %2 {offsets = [0, 0], sizes = [8, 256], strides = [1, 1]} : vector<8x512xf32> to vector<8x256xf32>
    %4 = vector.extract_strided_slice %2 {offsets = [0, 256], sizes = [8, 256], strides = [1, 1]} : vector<8x512xf32> to vector<8x256xf32>
    %5 = arith.maximumf %3, %4 : vector<8x256xf32>
    %c0_3 = arith.constant 0 : index
    %c0_4 = arith.constant 0 : index
    %6 = vector.load %arg3[%c0_3, %c0_4] : memref<1x256xf32, #tpu.memory_space<vmem>>, vector<1x256xf32>
    %7 = vector.broadcast %6 : vector<1x256xf32> to vector<8x256xf32>
    %8 = arith.addf %5, %7 : vector<8x256xf32>
    %9 = arith.truncf %8 : vector<8x256xf32> to vector<8x256xbf16>
    %c0_5 = arith.constant 0 : index
    %c0_6 = arith.constant 0 : index
    %10 = vector.load %arg4[%c0_5, %c0_6] : memref<256x512xbf16, #tpu.memory_space<vmem>>, vector<256x512xbf16>
    %cst_7 = arith.constant dense<0.000000e+00> : vector<8x512xf32>
    %11 = tpu.matmul %9, %10, %cst_7 {dimension_numbers = #tpu.dot_dimension_numbers<[1], [0], [0], [1], [0, 0, 1, 1], [], []>} : vector<8x256xbf16>, vector<256x512xbf16>, vector<8x512xf32> -> vector<8x512xf32>
    %12 = vector.extract_strided_slice %11 {offsets = [0, 0], sizes = [8, 256], strides = [1, 1]} : vector<8x512xf32> to vector<8x256xf32>
    %13 = vector.extract_strided_slice %11 {offsets = [0, 256], sizes = [8, 256], strides = [1, 1]} : vector<8x512xf32> to vector<8x256xf32>
    %14 = arith.maximumf %12, %13 : vector<8x256xf32>
    %c0_8 = arith.constant 0 : index
    %c0_9 = arith.constant 0 : index
    %15 = vector.load %arg5[%c0_8, %c0_9] : memref<1x256xf32, #tpu.memory_space<vmem>>, vector<1x256xf32>
    %16 = vector.broadcast %15 : vector<1x256xf32> to vector<8x256xf32>
    %17 = arith.addf %14, %16 : vector<8x256xf32>
    %18 = arith.truncf %17 : vector<8x256xf32> to vector<8x256xbf16>
    %c0_10 = arith.constant 0 : index
    %c0_11 = arith.constant 0 : index
    %19 = vector.load %arg6[%c0_10, %c0_11] : memref<2x256xbf16, #tpu.memory_space<vmem>>, vector<2x256xbf16>
    %cst_12 = arith.constant dense<0.000000e+00> : vector<2x8xf32>
    %20 = tpu.matmul %19, %18, %cst_12 {dimension_numbers = #tpu.dot_dimension_numbers<[1], [1], [0], [0], [0, 0, 1, 0], [], []>} : vector<2x256xbf16>, vector<8x256xbf16>, vector<2x8xf32> -> vector<2x8xf32>
    %c0_13 = arith.constant 0 : index
    %c0_14 = arith.constant 0 : index
    %21 = vector.load %arg7[%c0_13, %c0_14] : memref<2x1xf32, #tpu.memory_space<vmem>>, vector<2x1xf32>
    %22 = vector.broadcast %21 : vector<2x1xf32> to vector<2x8xf32>
    %23 = arith.addf %20, %22 : vector<2x8xf32>
    %c0_15 = arith.constant 0 : index
    %c0_16 = arith.constant 0 : index
    %24 = vector.load %arg8[%c0_15, %c0_16] : memref<2x8xf32, #tpu.memory_space<vmem>>, vector<2x8xf32>
    tpu.vector_store %arg8[%c0_15, %c0_16], %23 {strides = array<i32>} : memref<2x8xf32, #tpu.memory_space<vmem>>, vector<2x8xf32>,
    return
  }
  func.func @transform_0(%arg0: i32) -> (i32, i32) {
    %c0_i32 = arith.constant 0 : i32
    %c0_i32_0 = arith.constant 0 : i32
    return %arg0, %c0_i32 : i32, i32
  }
  func.func @transform_1(%arg0: i32) -> (i32, i32) {
    %c0_i32 = arith.constant 0 : i32
    %c0_i32_0 = arith.constant 0 : i32
    %c0_i32_1 = arith.constant 0 : i32
    return %c0_i32, %c0_i32_0 : i32, i32
  }
  func.func @transform_2(%arg0: i32) -> (i32, i32) {
    %c0_i32 = arith.constant 0 : i32
    %c0_i32_0 = arith.constant 0 : i32
    %c0_i32_1 = arith.constant 0 : i32
    return %c0_i32, %c0_i32_0 : i32, i32
  }
  func.func @transform_3(%arg0: i32) -> (i32, i32) {
    %c0_i32 = arith.constant 0 : i32
    %c0_i32_0 = arith.constant 0 : i32
    %c0_i32_1 = arith.constant 0 : i32
    return %c0_i32, %c0_i32_0 : i32, i32
  }
  func.func @transform_4(%arg0: i32) -> (i32, i32) {
    %c0_i32 = arith.constant 0 : i32
    %c0_i32_0 = arith.constant 0 : i32
    %c0_i32_1 = arith.constant 0 : i32
    return %c0_i32, %c0_i32_0 : i32, i32
  }
  func.func @transform_5(%arg0: i32) -> (i32, i32) {
    %c0_i32 = arith.constant 0 : i32
    %c0_i32_0 = arith.constant 0 : i32
    %c0_i32_1 = arith.constant 0 : i32
    return %c0_i32, %c0_i32_0 : i32, i32
  }
  func.func @transform_6(%arg0: i32) -> (i32, i32) {
    %c0_i32 = arith.constant 0 : i32
    %c0_i32_0 = arith.constant 0 : i32
    %c0_i32_1 = arith.constant 0 : i32
    return %c0_i32, %c0_i32_0 : i32, i32
  }
  func.func @transform_7(%arg0: i32) -> (i32, i32) {
    %c0_i32 = arith.constant 0 : i32
    %c0_i32_0 = arith.constant 0 : i32
    return %c0_i32, %arg0 : i32, i32
  }
}

</mosaic_0001>

<bundles_post_ra>
// kernel: tpu_custom_call.1
= control target key start
LH: loop header
LB: loop body
LE: loop exit
PB: predicated region body
PF: predicated region fallthrough
CT: control target
= control target key end

     0   :  { %12 = vsyncpa [#allocation3], 0  ;;  %s1262_s0 = inlined_call_operand.hbm [shape: bf16[8,64], index: 0, kind: input, shape index: {}]   ;;  %s1263_s1 = inlined_call_operand.hbm [shape: bf16[64,512], index: 1, kind: input, shape index: {}]   ;;  %s1264_s2 = inlined_call_operand.vmem [shape: f32[1,256], index: 2, kind: input, shape index: {}]   ;;  %s1265_s3 = inlined_call_operand.hbm [shape: bf16[256,512], index: 3, kind: input, shape index: {}]   ;;  %s1266_s4 = inlined_call_operand.vmem [shape: f32[1,256], index: 4, kind: input, shape index: {}]   ;;  %s1267_s5 = inlined_call_operand.vmem [shape: bf16[2,256], index: 5, kind: input, shape index: {}]   ;;  %s1268_s6 = inlined_call_operand.vmem [shape: f32[2,1], index: 6, kind: input, shape index: {}]   ;;  %s1269_s7 = inlined_call_operand.hbm [shape: f32[2,8], index: 7, kind: output, shape index: {}]  }
   0x1   :  { %13 = vsyncpa [#allocation6], 0 }
   0x2   :  { %14 = vsyncpa [#allocation4], 0  ;;  %s1148_s24 = smov [#allocation5]   ;;  %s1054_s28 = scalar_lea.hbm %s1263_s1, 2048 }
   0x3   :  { %s30_s25 = sshll.u32 %s1148_s24, 4  ;;  %p1055_p0 = scmp.ne.s32.totalorder %s1263_s1, %s1054_s28  ;;  %s31_s25 = int_to_ptr.vmem [resolvable:$true] %s30_s25 }
   0x4   :  { %p1058_p1 = scmp.lt.u32.totalorder %s1054_s28, %s1263_s1 }
   0x6   :  { %p1060_p2 = pnand %p1058_p1, %p1055_p0 }
   0x8   :  { %1063 = shalt.err (!%p1060_p2)
}
   0x9   :  { %s1064_s10 = scalar_lea.vmem %s31_s25, 2048  ;;  %p1069_p4 = scmp.lt.s32.totalorder %s31_s25, %s31_s25 }
   0xa   :  { %p1065_p3 = scmp.ne.s32.totalorder %s31_s25, %s1064_s10  ;;  %p1070_p5 = scmp.lt.s32.totalorder %s1064_s10, %s1064_s10 }
   0xc   :  { %p1071_p6 = por %p1070_p5, %p1069_p4 }
   0xe   :  { %p1072_p7 = pnand %p1071_p6, %p1065_p3 }
  0x10   :  { %1075 = shalt.err (!%p1072_p7)
}
  0x11   :  { %s1149_s11 = smov 256   ;;  %s1150_s12 = smov 16  }
  0x12   :  { %36 = dma.hbm_to_vmem [thread:$0]  %s1263_s1, 2048, %s31_s25, [#allocation6], %s1149_s11, %s1149_s11, %s1150_s12  }
  0x13   :  { %s1151_s15 = smov [#allocation2]   ;;  %s1152_s17 = smov [#allocation7]  }
  0x14   :  { %s21_s16 = sshll.u32 %s1151_s15, 4  ;;  %s44_s18 = sshll.u32 %s1152_s17, 4  ;;  %s22_s16 = int_to_ptr.vmem [resolvable:$true] %s21_s16  ;;  %s45_s18 = int_to_ptr.vmem [resolvable:$true] %s44_s18 }
  0x15   :  { %s1076_s21 = scalar_lea.hbm %s1262_s0, 64 }
  0x16   :  { %p1077_p8 = scmp.ne.s32.totalorder %s1262_s0, %s1076_s21  ;;  %p1080_p9 = scmp.lt.u32.totalorder %s1076_s21, %s1262_s0 }
  0x18   :  { %p1082_p10 = pnand %p1080_p9, %p1077_p8 }
  0x1a   :  { %1085 = shalt.err (!%p1082_p10)
}
  0x1b   :  { %s1086_s1 = scalar_lea.vmem %s22_s16, 64  ;;  %p1091_p12 = scmp.lt.s32.totalorder %s22_s16, %s22_s16 }
  0x1c   :  { %p1087_p11 = scmp.ne.s32.totalorder %s22_s16, %s1086_s1  ;;  %p1092_p13 = scmp.lt.s32.totalorder %s1086_s1, %s1086_s1 }
  0x1e   :  { %p1093_p0 = por %p1092_p13, %p1091_p12 }
  0x20   :  { %p1094_p1 = pnand %p1093_p0, %p1087_p11 }
  0x22   :  { %1097 = shalt.err (!%p1094_p1)
}
  0x23   :  { %24 = dma.hbm_to_vmem [thread:$0]  %s1262_s0, 64, %s22_s16, [#allocation3]  }
  0x24   :  { %s1098_s30 = scalar_lea.hbm %s1265_s3, 8192 }
  0x25   :  { %p1099_p2 = scmp.ne.s32.totalorder %s1265_s3, %s1098_s30  ;;  %p1102_p3 = scmp.lt.u32.totalorder %s1098_s30, %s1265_s3 }
  0x27   :  { %p1104_p4 = pnand %p1102_p3, %p1099_p2 }
  0x29   :  { %1107 = shalt.err (!%p1104_p4)
}
  0x2a   :  { %s1108_s14 = scalar_lea.vmem %s45_s18, 8192  ;;  %p1113_p6 = scmp.lt.s32.totalorder %s45_s18, %s45_s18 }
  0x2b   :  { %p1109_p5 = scmp.ne.s32.totalorder %s45_s18, %s1108_s14  ;;  %p1114_p7 = scmp.lt.s32.totalorder %s1108_s14, %s1108_s14 }
  0x2d   :  { %p1115_p8 = por %p1114_p7, %p1113_p6 }
  0x2f   :  { %p1116_p9 = pnand %p1115_p8, %p1109_p5 }
  0x31   :  { %1119 = shalt.err (!%p1116_p9)
}
  0x32   :  { %50 = dma.hbm_to_vmem [thread:$0]  %s1265_s3, 8192, %s45_s18, [#allocation6], %s1149_s11, %s1149_s11, %s1150_s12  }
  0x33   :  { %1142 = dma.done.wait [#allocation3], 64  }
  0x34   :  { %1143 = vsyncadd [#allocation3], 4294967232 }
  0x35   :  { %1144 = dma.done.wait [#allocation6], 10240  }
  0x36   :  { %1145 = vsyncadd [#allocation6], 4294957056  ;;  %v1153_v0 = vmov 0   ;;  %v934_v1 = vld [vmem:[#allocation5 + $0x4] ss:$16 sps:$4 sm:$0xff]   ;;  %vm164_vm0 = vcmask 523264  }
  0x37   :  { %200 = vmatprep.mubr.bf16.mxu0 %v1153_v0  ;;  %241 = vmatprep.mubr.bf16.mxu1 %v1153_v0  ;;  %v936_v2 = vld [vmem:[#allocation5 + $0xc] ss:$16 sps:$4 sm:$0xff]   ;;  %v938_v3 = vld [vmem:[#allocation5] ss:$16 sps:$4 sm:$0xff]   ;;  %v939_v4 = vld [vmem:[#allocation5 + $0x8] ss:$16 sps:$4 sm:$0xff]  }
  0x38   :  { %933 = vset.pattern.permute.xlu0 %v1153_v0  ;;  %168 = vmatprep.subr.bf16.mxu0 %v934_v1  ;;  %v940_v5 = vld [vmem:[#allocation5 + $0x24] ss:$16 sps:$4 sm:$0xff]   ;;  %v942_v6 = vld [vmem:[#allocation5 + $0x2c] ss:$16 sps:$4 sm:$0xff]   ;;  %v944_v7 = vld [vmem:[#allocation5 + $0x20] ss:$16 sps:$4 sm:$0xff]  }
  0x39   :  { %209 = vmatprep.subr.bf16.mxu1 %v936_v2  ;;  %169 = vmatpush1.bf16.msra.mxu0 %v938_v3  ;;  %v945_v8 = vld [vmem:[#allocation5 + $0x28] ss:$16 sps:$4 sm:$0xff]   ;;  %v946_v9 = vld [vmem:[#allocation5 + $0x44] ss:$16 sps:$4 sm:$0xff]   ;;  %v948_v10 = vld [vmem:[#allocation5 + $0x4c] ss:$16 sps:$4 sm:$0xff]  }
  0x3a   :  { %210 = vmatpush1.bf16.msra.mxu1 %v939_v4  ;;  %170 = vmatprep.subr.bf16.mxu0 %v940_v5  ;;  %v950_v11 = vld [vmem:[#allocation5 + $0x40] ss:$16 sps:$4 sm:$0xff]   ;;  %v951_v12 = vld [vmem:[#allocation5 + $0x48] ss:$16 sps:$4 sm:$0xff]   ;;  %v952_v13 = vld [vmem:[#allocation5 + $0x64] ss:$16 sps:$4 sm:$0xff]  }
  0x3b   :  { %211 = vmatprep.subr.bf16.mxu1 %v942_v6  ;;  %v954_v14 = vld [vmem:[#allocation5 + $0x6c] ss:$16 sps:$4 sm:$0xff]   ;;  %v956_v15 = vld [vmem:[#allocation5 + $0x60] ss:$16 sps:$4 sm:$0xff]   ;;  %v957_v16 = vld [vmem:[#allocation5 + $0x68] ss:$16 sps:$4 sm:$0xff]  }
  0x3c   :  { %v960_v17 = vld [vmem:[#allocation7 + $0x4] ss:$16 sps:$4 sm:$0xff]   ;;  %v963_v18 = vld [vmem:[#allocation7 + $0xc] ss:$16 sps:$4 sm:$0xff]   ;;  %v958_v20 = vld [vmem:[#allocation7] ss:$16 sps:$4 sm:$0xff]  }
  0x3d   :  { %171 = vmatpush1.bf16.msra.mxu0 %v944_v7  ;;  %v67_v19 = vld [vmem:[#allocation2] sm:$0xf]  ;;  %v961_v21 = vld [vmem:[#allocation7 + $0x8] ss:$16 sps:$4 sm:$0xff]   ;;  %v966_v22 = vld [vmem:[#allocation7 + $0x24] ss:$16 sps:$4 sm:$0xff]  }
  0x3e   :  { %212 = vmatpush1.bf16.msra.mxu1 %v945_v8  ;;  %172 = vmatprep.subr.bf16.mxu0 %v946_v9  ;;  %v969_v23 = vld [vmem:[#allocation7 + $0x2c] ss:$16 sps:$4 sm:$0xff]   ;;  %v964_v24 = vld [vmem:[#allocation7 + $0x20] ss:$16 sps:$4 sm:$0xff]   ;;  %v967_v25 = vld [vmem:[#allocation7 + $0x28] ss:$16 sps:$4 sm:$0xff]  }
  0x3f   :  { %213 = vmatprep.subr.bf16.mxu1 %v948_v10  ;;  %v972_v26 = vld [vmem:[#allocation7 + $0x44] ss:$16 sps:$4 sm:$0xff]   ;;  %v975_v27 = vld [vmem:[#allocation7 + $0x4c] ss:$16 sps:$4 sm:$0xff]   ;;  %v970_v28 = vld [vmem:[#allocation7 + $0x40] ss:$16 sps:$4 sm:$0xff]  }
  0x40   :  { %v973_v29 = vld [vmem:[#allocation7 + $0x48] ss:$16 sps:$4 sm:$0xff]   ;;  %v978_v30 = vld [vmem:[#allocation7 + $0x64] ss:$16 sps:$4 sm:$0xff]   ;;  %v981_v31 = vld [vmem:[#allocation7 + $0x6c] ss:$16 sps:$4 sm:$0xff]  }
  0x41   :  { %173 = vmatpush1.bf16.msra.mxu0 %v950_v11  ;;  %v976_v32 = vld [vmem:[#allocation7 + $0x60] ss:$16 sps:$4 sm:$0xff]   ;;  %v979_v33 = vld [vmem:[#allocation7 + $0x68] ss:$16 sps:$4 sm:$0xff]   ;;  %v984_v34 = vld [vmem:[#allocation7 + $0x84] ss:$16 sps:$4 sm:$0xff]  }
  0x42   :  { %214 = vmatpush1.bf16.msra.mxu1 %v951_v12  ;;  %174 = vmatprep.subr.bf16.mxu0 %v952_v13  ;;  %v987_v35 = vld [vmem:[#allocation7 + $0x8c] ss:$16 sps:$4 sm:$0xff]   ;;  %v982_v36 = vld [vmem:[#allocation7 + $0x80] ss:$16 sps:$4 sm:$0xff]   ;;  %v985_v37 = vld [vmem:[#allocation7 + $0x88] ss:$16 sps:$4 sm:$0xff]  }
  0x43   :  { %215 = vmatprep.subr.bf16.mxu1 %v954_v14  ;;  %v990_v38 = vld [vmem:[#allocation7 + $0xa4] ss:$16 sps:$4 sm:$0xff]   ;;  %v993_v39 = vld [vmem:[#allocation7 + $0xac] ss:$16 sps:$4 sm:$0xff]   ;;  %v988_v40 = vld [vmem:[#allocation7 + $0xa0] ss:$16 sps:$4 sm:$0xff]  }
  0x44   :  { %v991_v41 = vld [vmem:[#allocation7 + $0xa8] ss:$16 sps:$4 sm:$0xff]   ;;  %v996_v42 = vld [vmem:[#allocation7 + $0xc4] ss:$16 sps:$4 sm:$0xff]   ;;  %v999_v43 = vld [vmem:[#allocation7 + $0xcc] ss:$16 sps:$4 sm:$0xff]  }
  0x45   :  { %175 = vmatpush1.bf16.msra.mxu0 %v956_v15  ;;  %v994_v44 = vld [vmem:[#allocation7 + $0xc0] ss:$16 sps:$4 sm:$0xff]   ;;  %v997_v45 = vld [vmem:[#allocation7 + $0xc8] ss:$16 sps:$4 sm:$0xff]   ;;  %v1002_v46 = vld [vmem:[#allocation7 + $0xe4] ss:$16 sps:$4 sm:$0xff]  }
  0x46   :  { %216 = vmatpush1.bf16.msra.mxu1 %v957_v16  ;;  %652 = vmatprep.subr.bf16.mxu0 %v960_v17  ;;  %v1005_v47 = vld [vmem:[#allocation7 + $0xec] ss:$16 sps:$4 sm:$0xff]   ;;  %v1000_v48 = vld [vmem:[#allocation7 + $0xe0] ss:$16 sps:$4 sm:$0xff]   ;;  %v1003_v49 = vld [vmem:[#allocation7 + $0xe8] ss:$16 sps:$4 sm:$0xff]  }
  0x47   :  { %693 = vmatprep.subr.bf16.mxu1 %v963_v18  ;;  %v1008_v50 = vld [vmem:[#allocation7 + $0x104] ss:$16 sps:$4 sm:$0xff]   ;;  %v1011_v51 = vld [vmem:[#allocation7 + $0x10c] ss:$16 sps:$4 sm:$0xff]   ;;  %v1006_v52 = vld [vmem:[#allocation7 + $0x100] ss:$16 sps:$4 sm:$0xff]   ;;  %v254_v18 = vlaneseq }
  0x48   :  { %858 = vmatmul.mubr.msk.bf16.vlgmr.msra.gmra.mrb[0].mxu0 %vm164_vm0, %v67_v19  ;;  %v1009_v53 = vld [vmem:[#allocation7 + $0x108] ss:$16 sps:$4 sm:$0xff]   ;;  %v1014_v54 = vld [vmem:[#allocation7 + $0x124] ss:$16 sps:$4 sm:$0xff]   ;;  %v1017_v55 = vld [vmem:[#allocation7 + $0x12c] ss:$16 sps:$4 sm:$0xff]  }
  0x49   :  { %859 = vmatmul.mubr.msk.bf16.vlgmr.msra.gmra.mrb[0].mxu1 %vm164_vm0, %v67_v19  ;;  %653 = vmatpush1.bf16.msra.mxu0 %v958_v20  ;;  %v1012_v56 = vld [vmem:[#allocation7 + $0x120] ss:$16 sps:$4 sm:$0xff]   ;;  %v1015_v57 = vld [vmem:[#allocation7 + $0x128] ss:$16 sps:$4 sm:$0xff]   ;;  %v1020_v58 = vld [vmem:[#allocation7 + $0x144] ss:$16 sps:$4 sm:$0xff]  }
  0x4a   :  { %694 = vmatpush1.bf16.msra.mxu1 %v961_v21  ;;  %654 = vmatprep.subr.bf16.mxu0 %v966_v22  ;;  %v1023_v59 = vld [vmem:[#allocation7 + $0x14c] ss:$16 sps:$4 sm:$0xff]   ;;  %v1018_v60 = vld [vmem:[#allocation7 + $0x140] ss:$16 sps:$4 sm:$0xff]   ;;  %v1021_v61 = vld [vmem:[#allocation7 + $0x148] ss:$16 sps:$4 sm:$0xff]  }
  0x4b   :  { %695 = vmatprep.subr.bf16.mxu1 %v969_v23  ;;  %v1026_v62 = vld [vmem:[#allocation7 + $0x164] ss:$16 sps:$4 sm:$0xff]   ;;  %v1029_v63 = vld [vmem:[#allocation7 + $0x16c] ss:$16 sps:$4 sm:$0xff]   ;;  %v1024_v0 = vld [vmem:[#allocation7 + $0x160] ss:$16 sps:$4 sm:$0xff]  }
  0x4c   :  { %v1027_v1 = vld [vmem:[#allocation7 + $0x168] ss:$16 sps:$4 sm:$0xff]   ;;  %v1032_v2 = vld [vmem:[#allocation7 + $0x184] ss:$16 sps:$4 sm:$0xff]   ;;  %v1035_v3 = vld [vmem:[#allocation7 + $0x18c] ss:$16 sps:$4 sm:$0xff]  }
  0x4d   :  { %655 = vmatpush1.bf16.msra.mxu0 %v964_v24  ;;  %v1030_v4 = vld [vmem:[#allocation7 + $0x180] ss:$16 sps:$4 sm:$0xff]   ;;  %v1033_v5 = vld [vmem:[#allocation7 + $0x188] ss:$16 sps:$4 sm:$0xff]   ;;  %v1038_v6 = vld [vmem:[#allocation7 + $0x1a4] ss:$16 sps:$4 sm:$0xff]  }
  0x4e   :  { %696 = vmatpush1.bf16.msra.mxu1 %v967_v25  ;;  %656 = vmatprep.subr.bf16.mxu0 %v972_v26  ;;  %v1041_v7 = vld [vmem:[#allocation7 + $0x1ac] ss:$16 sps:$4 sm:$0xff]   ;;  %v1036_v8 = vld [vmem:[#allocation7 + $0x1a0] ss:$16 sps:$4 sm:$0xff]   ;;  %v1039_v9 = vld [vmem:[#allocation7 + $0x1a8] ss:$16 sps:$4 sm:$0xff]  }
  0x4f   :  { %697 = vmatprep.subr.bf16.mxu1 %v975_v27  ;;  %v1044_v10 = vld [vmem:[#allocation7 + $0x1c4] ss:$16 sps:$4 sm:$0xff]   ;;  %v1047_v11 = vld [vmem:[#allocation7 + $0x1cc] ss:$16 sps:$4 sm:$0xff]   ;;  %v1042_v12 = vld [vmem:[#allocation7 + $0x1c0] ss:$16 sps:$4 sm:$0xff]  }
  0x50   :  { %v1045_v13 = vld [vmem:[#allocation7 + $0x1c8] ss:$16 sps:$4 sm:$0xff]   ;;  %v1050_v14 = vld [vmem:[#allocation7 + $0x1e4] ss:$16 sps:$4 sm:$0xff]   ;;  %v1053_v15 = vld [vmem:[#allocation7 + $0x1ec] ss:$16 sps:$4 sm:$0xff]  }
  0x51   :  { %657 = vmatpush1.bf16.msra.mxu0 %v970_v28  ;;  %v1048_v16 = vld [vmem:[#allocation7 + $0x1e0] ss:$16 sps:$4 sm:$0xff]   ;;  %v1051_v17 = vld [vmem:[#allocation7 + $0x1e8] ss:$16 sps:$4 sm:$0xff]   ;;  %v255_v19 = vshrl.u32 %v254_v18, 7  ;;  %vm824_vm1 = vcmask 58368  }
  0x52   :  { %698 = vmatpush1.bf16.msra.mxu1 %v973_v29  ;;  %658 = vmatprep.subr.bf16.mxu0 %v978_v30  ;;  %v252_v21 = vld [vmem:[%s1264_s2] sm:$0x3] }
  0x53   :  { %699 = vmatprep.subr.bf16.mxu1 %v981_v31  ;;  %v256_v20 = vsub.s32 0, %v255_v19  ;;  %v260_v22 = vsub.s32 1, %v255_v19 }
  0x55   :  { %659 = vmatpush1.bf16.msra.mxu0 %v976_v32  ;;  %v257_v23 = vrot.slane %v252_v21, %v256_v20  ;;  %v261_v26 = vrot.slane %v252_v21, %v260_v22 }
  0x56   :  { %700 = vmatpush1.bf16.msra.mxu1 %v979_v33  ;;  %660 = vmatprep.subr.bf16.mxu0 %v984_v34 }
  0x57   :  { %701 = vmatprep.subr.bf16.mxu1 %v987_v35 }
  0x59   :  { %661 = vmatpush1.bf16.msra.mxu0 %v982_v36 }
  0x5a   :  { %702 = vmatpush1.bf16.msra.mxu1 %v985_v37  ;;  %662 = vmatprep.subr.bf16.mxu0 %v990_v38 }
  0x5b   :  { %703 = vmatprep.subr.bf16.mxu1 %v993_v39  ;;  %v1154_v39 = vmov 1966171168  }
  0x5d   :  { %663 = vmatpush1.bf16.msra.mxu0 %v988_v40  ;;  %v769_v40 = vunpack.c.l.s4 %v1154_v39 }
  0x5e   :  { %704 = vmatpush1.bf16.msra.mxu1 %v991_v41  ;;  %664 = vmatprep.subr.bf16.mxu0 %v996_v42  ;;  %v924_v41 = vld.sshfl [vmem:[%s1267_s5] sm:$0x11 pattern:$0x75316420] }
  0x5f   :  { %705 = vmatprep.subr.bf16.mxu1 %v999_v43  ;;  %v770_v42 = vunpack.c.0.s8 %v769_v40  ;;  %v767_v43 = vcombine.high %v924_v41, %v924_v41 }
  0x61   :  { %665 = vmatpush1.bf16.msra.mxu0 %v994_v44  ;;  %v773_v44 = vsub.s32 %v770_v42, %v255_v19 }
  0x62   :  { %706 = vmatpush1.bf16.msra.mxu1 %v997_v45  ;;  %666 = vmatprep.subr.bf16.mxu0 %v1002_v46 }
  0x63   :  { %707 = vmatprep.subr.bf16.mxu1 %v1005_v47  ;;  %v781_v45 = vrot.slane %v767_v43, %v773_v44  ;;  %v774_v46 = vrot.slane %v924_v41, %v773_v44  ;;  %v753_v47 = vld [vmem:[%s1268_s6] sm:$0x3] }
  0x64   :  { %756 = vperm.xlu0 %933, %v753_v47  }
  0x65   :  { %667 = vmatpush1.bf16.msra.mxu0 %v1000_v48  ;;  %v736_v48 = vld [vmem:[%s1266_s4] sm:$0x3]  ;;  %s1155_s4 = smov [#allocation8]  }
  0x66   :  { %708 = vmatpush1.bf16.msra.mxu1 %v1003_v49  ;;  %668 = vmatprep.subr.bf16.mxu0 %v1008_v50  ;;  %v741_v49 = vrot.slane %v736_v48, %v256_v20  ;;  %s832_s5 = sshll.u32 %s1155_s4, 4  ;;  %s833_s5 = int_to_ptr.vmem [resolvable:$true] %s832_s5 }
  0x67   :  { %709 = vmatprep.subr.bf16.mxu1 %v1011_v51  ;;  %s1120_s6 = scalar_lea.vmem %s833_s5, 32  ;;  %p1125_p11 = scmp.lt.s32.totalorder %s833_s5, %s833_s5 }
  0x68   :  { %p1121_p10 = scmp.ne.s32.totalorder %s833_s5, %s1120_s6  ;;  %p1126_p12 = scmp.lt.s32.totalorder %s1120_s6, %s1120_s6 }
  0x69   :  { %669 = vmatpush1.bf16.msra.mxu0 %v1006_v52  ;;  %v745_v52 = vrot.slane %v736_v48, %v260_v22 }
  0x6a   :  { %710 = vmatpush1.bf16.msra.mxu1 %v1009_v53  ;;  %670 = vmatprep.subr.bf16.mxu0 %v1014_v54  ;;  %p1127_p13 = por %p1126_p12, %p1125_p11 }
  0x6b   :  { %711 = vmatprep.subr.bf16.mxu1 %v1017_v55 }
  0x6c   :  { %p1128_p0 = pnand %p1127_p13, %p1121_p10 }
  0x6d   :  { %671 = vmatpush1.bf16.msra.mxu0 %v1012_v56 }
  0x6e   :  { %712 = vmatpush1.bf16.msra.mxu1 %v1015_v57  ;;  %672 = vmatprep.subr.bf16.mxu0 %v1020_v58 }
  0x6f   :  { %713 = vmatprep.subr.bf16.mxu1 %v1023_v59 }
  0x71   :  { %673 = vmatpush1.bf16.msra.mxu0 %v1018_v60 }
  0x72   :  { %714 = vmatpush1.bf16.msra.mxu1 %v1021_v61  ;;  %674 = vmatprep.subr.bf16.mxu0 %v1026_v62 }
  0x73   :  { %715 = vmatprep.subr.bf16.mxu1 %v1029_v63 }
  0x75   :  { %675 = vmatpush1.bf16.msra.mxu0 %v1024_v0 }
  0x76   :  { %716 = vmatpush1.bf16.msra.mxu1 %v1027_v1  ;;  %676 = vmatprep.subr.bf16.mxu0 %v1032_v2 }
  0x77   :  { %717 = vmatprep.subr.bf16.mxu1 %v1035_v3 }
  0x79   :  { %677 = vmatpush1.bf16.msra.mxu0 %v1030_v4 }
  0x7a   :  { %718 = vmatpush1.bf16.msra.mxu1 %v1033_v5  ;;  %678 = vmatprep.subr.bf16.mxu0 %v1038_v6 }
  0x7b   :  { %719 = vmatprep.subr.bf16.mxu1 %v1041_v7 }
  0x7d   :  { %679 = vmatpush1.bf16.msra.mxu0 %v1036_v8 }
  0x7e   :  { %720 = vmatpush1.bf16.msra.mxu1 %v1039_v9  ;;  %680 = vmatprep.subr.bf16.mxu0 %v1044_v10 }
  0x7f   :  { %721 = vmatprep.subr.bf16.mxu1 %v1047_v11 }
  0x81   :  { %681 = vmatpush1.bf16.msra.mxu0 %v1042_v12 }
  0x82   :  { %722 = vmatpush1.bf16.msra.mxu1 %v1045_v13  ;;  %682 = vmatprep.subr.bf16.mxu0 %v1050_v14 }
  0x83   :  { %723 = vmatprep.subr.bf16.mxu1 %v1053_v15 }
  0x85   :  { %683 = vmatpush1.bf16.msra.mxu0 %v1048_v16 }
  0x86   :  { %724 = vmatpush1.bf16.msra.mxu1 %v1051_v17 }
  0xe3   :  { %v757_v1 = vpop.permute.xlu0 %756 }
 0x11b   :  { %v202_v24 = vpop.f32.mrb[0].mxu0 }
 0x11c   :  { %v243_v25 = vpop.f32.mrb[0].mxu1  ;;  %v204_v28 = vpop.f32.mrb[1].mxu0 }
 0x11d   :  { %v250_v27 = vmax.f32 %v202_v24, %v243_v25  ;;  %v245_v29 = vpop.f32.mrb[1].mxu1  ;;  %v206_v31 = vpop.f32.mrb[2].mxu0 }
 0x11e   :  { %v251_v30 = vmax.f32 %v204_v28, %v245_v29  ;;  %v247_v32 = vpop.f32.mrb[2].mxu1  ;;  %v207_v34 = vpop.f32.mrb[3].mxu0 }
 0x11f   :  { %v264_v33 = vadd.f32 %v257_v23, %v250_v27  ;;  %v248_v35 = vpop.f32.mrb[3].mxu1 }
 0x120   :  { %v265_v36 = vadd.f32 %v261_v26, %v251_v30 }
 0x121   :  { %v266_v38 = vpack.c.bf16 %v264_v33, %v264_v33 }
 0x122   :  { %v267_v37 = vpack.c.bf16 %v265_v36, %v265_v36 }
 0x124   :  { %684 = vmatprep.mubr.bf16.mxu0 %v267_v37  ;;  %725 = vmatprep.mubr.bf16.mxu1 %v267_v37 }
 0x125   :  { %685 = vmatmul.mubr.bf16.vlgmr.msra.gmra.mrb[4].mxu0 %v266_v38  ;;  %726 = vmatmul.mubr.bf16.vlgmr.msra.gmra.mrb[4].mxu1 %v266_v38 }
 0x126   :  { %816 = vmatprep.mubr.bf16.mxu0 %v781_v45 }
 0x1f8   :  { %v686_v50 = vpop.f32.mrb[4].mxu0  ;;  %v727_v51 = vpop.f32.mrb[4].mxu1 }
 0x1f9   :  { %v734_v53 = vmax.f32 %v686_v50, %v727_v51  ;;  %v688_v54 = vpop.f32.mrb[5].mxu0  ;;  %v729_v55 = vpop.f32.mrb[5].mxu1 }
 0x1fa   :  { %v735_v56 = vmax.f32 %v688_v54, %v729_v55  ;;  %v690_v57 = vpop.f32.mrb[6].mxu0  ;;  %v731_v58 = vpop.f32.mrb[6].mxu1 }
 0x1fb   :  { %v748_v59 = vadd.f32 %v741_v49, %v734_v53  ;;  %v691_v60 = vpop.f32.mrb[7].mxu0  ;;  %v732_v61 = vpop.f32.mrb[7].mxu1 }
 0x1fc   :  { %v749_v62 = vadd.f32 %v745_v52, %v735_v56 }
 0x1fd   :  { %v750_v0 = vpack.c.bf16 %v748_v59, %v748_v59 }
 0x1fe   :  { %v751_v63 = vpack.c.bf16 %v749_v62, %v749_v62 }
 0x200   :  { %784 = vmatprep.subr.bf16.mxu0 %v751_v63 }
 0x201   :  { %785 = vmatpush1.bf16.xpose.msra.mxu0 %v750_v0 }
 0x208   :  { %817 = vmatmul.mubr.bf16.vlgmr.msra.gmra.mrb[8].mxu0 %v774_v46 }
 0x2db   :  { %v818_v2 = vpop.f32.mrb[8].mxu0 }
 0x2dc   :  { %v819_v3 = vadd.f32 %v818_v2, %v757_v1  ;;  %v820_v4 = vpop.f32.mrb[9].mxu0 }
 0x2dd   :  { %v821_v5 = vpop.f32.mrb[10].mxu0 }
 0x2de   :  { %v822_v6 = vpop.f32.mrb[11].mxu0  ;;  %825 = vst.msk [vmem:[#allocation8] sm:$0x3] %vm824_vm1, %v819_v3 }
 0x2df   :  { %1131 = shalt.err (!%p1128_p0)
}
 0x2e0   :  { %s1132_s22 = scalar_lea.hbm %s1269_s7, 32 }
 0x2e1   :  { %p1133_p1 = scmp.ne.s32.totalorder %s1269_s7, %s1132_s22  ;;  %p1136_p2 = scmp.lt.u32.totalorder %s1132_s22, %s1269_s7 }
 0x2e3   :  { %p1138_p3 = pnand %p1136_p2, %p1133_p1 }
 0x2e5   :  { %1141 = shalt.err (!%p1138_p3)
}
 0x2e6   :  { %835 = dma.vmem_to_hbm [thread:$0]  %s833_s5, 32, %s1269_s7, [#allocation4]  }
 0x2e7   :  { %1146 = dma.done.wait [#allocation4], 32  }
 0x2e8   :  { %1147 = vsyncadd [#allocation4], 4294967264 }
 0x2e9   :  { %839 = vsyncpa [#allocation3], 1 }
 0x2ea   :  { %840 = vsyncpa [#allocation6], 1 }
 0x2eb   :  { %841 = vsyncpa [#allocation4], 1 }

// kernel: tpu_custom_call.1
= control target key start
LH: loop header
LB: loop body
LE: loop exit
PB: predicated region body
PF: predicated region fallthrough
CT: control target
= control target key end

     0   :  { %12 = vsyncpa [#allocation3], 0  ;;  %s1262_s0 = inlined_call_operand.hbm [shape: bf16[8,64], index: 0, kind: input, shape index: {}]   ;;  %s1263_s1 = inlined_call_operand.hbm [shape: bf16[64,512], index: 1, kind: input, shape index: {}]   ;;  %s1264_s2 = inlined_call_operand.vmem [shape: f32[1,256], index: 2, kind: input, shape index: {}]   ;;  %s1265_s3 = inlined_call_operand.hbm [shape: bf16[256,512], index: 3, kind: input, shape index: {}]   ;;  %s1266_s4 = inlined_call_operand.vmem [shape: f32[1,256], index: 4, kind: input, shape index: {}]   ;;  %s1267_s5 = inlined_call_operand.vmem [shape: bf16[2,256], index: 5, kind: input, shape index: {}]   ;;  %s1268_s6 = inlined_call_operand.vmem [shape: f32[2,1], index: 6, kind: input, shape index: {}]   ;;  %s1269_s7 = inlined_call_operand.hbm [shape: f32[2,8], index: 7, kind: output, shape index: {}]  }
   0x1   :  { %13 = vsyncpa [#allocation6], 0 }
   0x2   :  { %14 = vsyncpa [#allocation4], 0  ;;  %s1148_s24 = smov [#allocation5]   ;;  %s1054_s28 = scalar_lea.hbm %s1263_s1, 2048 }
   0x3   :  { %s30_s25 = sshll.u32 %s1148_s24, 4  ;;  %p1055_p0 = scmp.ne.s32.totalorder %s1263_s1, %s1054_s28  ;;  %s31_s25 = int_to_ptr.vmem [resolvable:$true] %s30_s25 }
   0x4   :  { %p1058_p1 = scmp.lt.u32.totalorder %s1054_s28, %s1263_s1 }
   0x6   :  { %p1060_p2 = pnand %p1058_p1, %p1055_p0 }
   0x8   :  { %1063 = shalt.err (!%p1060_p2)
}
   0x9   :  { %s1064_s10 = scalar_lea.vmem %s31_s25, 2048  ;;  %p1069_p4 = scmp.lt.s32.totalorder %s31_s25, %s31_s25 }
   0xa   :  { %p1065_p3 = scmp.ne.s32.totalorder %s31_s25, %s1064_s10  ;;  %p1070_p5 = scmp.lt.s32.totalorder %s1064_s10, %s1064_s10 }
   0xc   :  { %p1071_p6 = por %p1070_p5, %p1069_p4 }
   0xe   :  { %p1072_p7 = pnand %p1071_p6, %p1065_p3 }
  0x10   :  { %1075 = shalt.err (!%p1072_p7)
}
  0x11   :  { %s1149_s11 = smov 256   ;;  %s1150_s12 = smov 16  }
  0x12   :  { %36 = dma.hbm_to_vmem [thread:$0]  %s1263_s1, 2048, %s31_s25, [#allocation6], %s1149_s11, %s1149_s11, %s1150_s12  }
  0x13   :  { %s1151_s15 = smov [#allocation2]   ;;  %s1152_s17 = smov [#allocation7]  }
  0x14   :  { %s21_s16 = sshll.u32 %s1151_s15, 4  ;;  %s44_s18 = sshll.u32 %s1152_s17, 4  ;;  %s22_s16 = int_to_ptr.vmem [resolvable:$true] %s21_s16  ;;  %s45_s18 = int_to_ptr.vmem [resolvable:$true] %s44_s18 }
  0x15   :  { %s1076_s21 = scalar_lea.hbm %s1262_s0, 64 }
  0x16   :  { %p1077_p8 = scmp.ne.s32.totalorder %s1262_s0, %s1076_s21  ;;  %p1080_p9 = scmp.lt.u32.totalorder %s1076_s21, %s1262_s0 }
  0x18   :  { %p1082_p10 = pnand %p1080_p9, %p1077_p8 }
  0x1a   :  { %1085 = shalt.err (!%p1082_p10)
}
  0x1b   :  { %s1086_s1 = scalar_lea.vmem %s22_s16, 64  ;;  %p1091_p12 = scmp.lt.s32.totalorder %s22_s16, %s22_s16 }
  0x1c   :  { %p1087_p11 = scmp.ne.s32.totalorder %s22_s16, %s1086_s1  ;;  %p1092_p13 = scmp.lt.s32.totalorder %s1086_s1, %s1086_s1 }
  0x1e   :  { %p1093_p0 = por %p1092_p13, %p1091_p12 }
  0x20   :  { %p1094_p1 = pnand %p1093_p0, %p1087_p11 }
  0x22   :  { %1097 = shalt.err (!%p1094_p1)
}
  0x23   :  { %24 = dma.hbm_to_vmem [thread:$0]  %s1262_s0, 64, %s22_s16, [#allocation3]  }
  0x24   :  { %s1098_s30 = scalar_lea.hbm %s1265_s3, 8192 }
  0x25   :  { %p1099_p2 = scmp.ne.s32.totalorder %s1265_s3, %s1098_s30  ;;  %p1102_p3 = scmp.lt.u32.totalorder %s1098_s30, %s1265_s3 }
  0x27   :  { %p1104_p4 = pnand %p1102_p3, %p1099_p2 }
  0x29   :  { %1107 = shalt.err (!%p1104_p4)
}
  0x2a   :  { %s1108_s14 = scalar_lea.vmem %s45_s18, 8192  ;;  %p1113_p6 = scmp.lt.s32.totalorder %s45_s18, %s45_s18 }
  0x2b   :  { %p1109_p5 = scmp.ne.s32.totalorder %s45_s18, %s1108_s14  ;;  %p1114_p7 = scmp.lt.s32.totalorder %s1108_s14, %s1108_s14 }
  0x2d   :  { %p1115_p8 = por %p1114_p7, %p1113_p6 }
  0x2f   :  { %p1116_p9 = pnand %p1115_p8, %p1109_p5 }
  0x31   :  { %1119 = shalt.err (!%p1116_p9)
}
  0x32   :  { %50 = dma.hbm_to_vmem [thread:$0]  %s1265_s3, 8192, %s45_s18, [#allocation6], %s1149_s11, %s1149_s11, %s1150_s12  }
  0x33   :  { %1142 = dma.done.wait [#allocation3], 64  }
  0x34   :  { %1143 = vsyncadd [#allocation3], 4294967232 }
  0x35   :  { %1144 = dma.done.wait [#allocation6], 10240  }
  0x36   :  { %1145 = vsyncadd [#allocation6], 4294957056  ;;  %v1153_v0 = vmov 0   ;;  %v934_v1 = vld [vmem:[#allocation5 + $0x4] ss:$16 sps:$4 sm:$0xff]   ;;  %vm164_vm0 = vcmask 523264  }
  0x37   :  { %200 = vmatprep.mubr.bf16.mxu0 %v1153_v0  ;;  %241 = vmatprep.mubr.bf16.mxu1 %v1153_v0  ;;  %v936_v2 = vld [vmem:[#allocation5 + $0xc] ss:$16 sps:$4 sm:$0xff]   ;;  %v938_v3 = vld [vmem:[#allocation5] ss:$16 sps:$4 sm:$0xff]   ;;  %v939_v4 = vld [vmem:[#allocation5 + $0x8] ss:$16 sps:$4 sm:$0xff]  }
  0x38   :  { %933 = vset.pattern.permute.xlu0 %v1153_v0  ;;  %168 = vmatprep.subr.bf16.mxu0 %v934_v1  ;;  %v940_v5 = vld [vmem:[#allocation5 + $0x24] ss:$16 sps:$4 sm:$0xff]   ;;  %v942_v6 = vld [vmem:[#allocation5 + $0x2c] ss:$16 sps:$4 sm:$0xff]   ;;  %v944_v7 = vld [vmem:[#allocation5 + $0x20] ss:$16 sps:$4 sm:$0xff]  }
  0x39   :  { %209 = vmatprep.subr.bf16.mxu1 %v936_v2  ;;  %169 = vmatpush1.bf16.msra.mxu0 %v938_v3  ;;  %v945_v8 = vld [vmem:[#allocation5 + $0x28] ss:$16 sps:$4 sm:$0xff]   ;;  %v946_v9 = vld [vmem:[#allocation5 + $0x44] ss:$16 sps:$4 sm:$0xff]   ;;  %v948_v10 = vld [vmem:[#allocation5 + $0x4c] ss:$16 sps:$4 sm:$0xff]  }
  0x3a   :  { %210 = vmatpush1.bf16.msra.mxu1 %v939_v4  ;;  %170 = vmatprep.subr.bf16.mxu0 %v940_v5  ;;  %v950_v11 = vld [vmem:[#allocation5 + $0x40] ss:$16 sps:$4 sm:$0xff]   ;;  %v951_v12 = vld [vmem:[#allocation5 + $0x48] ss:$16 sps:$4 sm:$0xff]   ;;  %v952_v13 = vld [vmem:[#allocation5 + $0x64] ss:$16 sps:$4 sm:$0xff]  }
  0x3b   :  { %211 = vmatprep.subr.bf16.mxu1 %v942_v6  ;;  %v954_v14 = vld [vmem:[#allocation5 + $0x6c] ss:$16 sps:$4 sm:$0xff]   ;;  %v956_v15 = vld [vmem:[#allocation5 + $0x60] ss:$16 sps:$4 sm:$0xff]   ;;  %v957_v16 = vld [vmem:[#allocation5 + $0x68] ss:$16 sps:$4 sm:$0xff]  }
  0x3c   :  { %v960_v17 = vld [vmem:[#allocation7 + $0x4] ss:$16 sps:$4 sm:$0xff]   ;;  %v963_v18 = vld [vmem:[#allocation7 + $0xc] ss:$16 sps:$4 sm:$0xff]   ;;  %v958_v20 = vld [vmem:[#allocation7] ss:$16 sps:$4 sm:$0xff]  }
  0x3d   :  { %171 = vmatpush1.bf16.msra.mxu0 %v944_v7  ;;  %v67_v19 = vld [vmem:[#allocation2] sm:$0xf]  ;;  %v961_v21 = vld [vmem:[#allocation7 + $0x8] ss:$16 sps:$4 sm:$0xff]   ;;  %v966_v22 = vld [vmem:[#allocation7 + $0x24] ss:$16 sps:$4 sm:$0xff]  }
  0x3e   :  { %212 = vmatpush1.bf16.msra.mxu1 %v945_v8  ;;  %172 = vmatprep.subr.bf16.mxu0 %v946_v9  ;;  %v969_v23 = vld [vmem:[#allocation7 + $0x2c] ss:$16 sps:$4 sm:$0xff]   ;;  %v964_v24 = vld [vmem:[#allocation7 + $0x20] ss:$16 sps:$4 sm:$0xff]   ;;  %v967_v25 = vld [vmem:[#allocation7 + $0x28] ss:$16 sps:$4 sm:$0xff]  }
  0x3f   :  { %213 = vmatprep.subr.bf16.mxu1 %v948_v10  ;;  %v972_v26 = vld [vmem:[#allocation7 + $0x44] ss:$16 sps:$4 sm:$0xff]   ;;  %v975_v27 = vld [vmem:[#allocation7 + $0x4c] ss:$16 sps:$4 sm:$0xff]   ;;  %v970_v28 = vld [vmem:[#allocation7 + $0x40] ss:$16 sps:$4 sm:$0xff]  }
  0x40   :  { %v973_v29 = vld [vmem:[#allocation7 + $0x48] ss:$16 sps:$4 sm:$0xff]   ;;  %v978_v30 = vld [vmem:[#allocation7 + $0x64] ss:$16 sps:$4 sm:$0xff]   ;;  %v981_v31 = vld [vmem:[#allocation7 + $0x6c] ss:$16 sps:$4 sm:$0xff]  }
  0x41   :  { %173 = vmatpush1.bf16.msra.mxu0 %v950_v11  ;;  %v976_v32 = vld [vmem:[#allocation7 + $0x60] ss:$16 sps:$4 sm:$0xff]   ;;  %v979_v33 = vld [vmem:[#allocation7 + $0x68] ss:$16 sps:$4 sm:$0xff]   ;;  %v984_v34 = vld [vmem:[#allocation7 + $0x84] ss:$16 sps:$4 sm:$0xff]  }
  0x42   :  { %214 = vmatpush1.bf16.msra.mxu1 %v951_v12  ;;  %174 = vmatprep.subr.bf16.mxu0 %v952_v13  ;;  %v987_v35 = vld [vmem:[#allocation7 + $0x8c] ss:$16 sps:$4 sm:$0xff]   ;;  %v982_v36 = vld [vmem:[#allocation7 + $0x80] ss:$16 sps:$4 sm:$0xff]   ;;  %v985_v37 = vld [vmem:[#allocation7 + $0x88] ss:$16 sps:$4 sm:$0xff]  }
  0x43   :  { %215 = vmatprep.subr.bf16.mxu1 %v954_v14  ;;  %v990_v38 = vld [vmem:[#allocation7 + $0xa4] ss:$16 sps:$4 sm:$0xff]   ;;  %v993_v39 = vld [vmem:[#allocation7 + $0xac] ss:$16 sps:$4 sm:$0xff]   ;;  %v988_v40 = vld [vmem:[#allocation7 + $0xa0] ss:$16 sps:$4 sm:$0xff]  }
  0x44   :  { %v991_v41 = vld [vmem:[#allocation7 + $0xa8] ss:$16 sps:$4 sm:$0xff]   ;;  %v996_v42 = vld [vmem:[#allocation7 + $0xc4] ss:$16 sps:$4 sm:$0xff]   ;;  %v999_v43 = vld [vmem:[#allocation7 + $0xcc] ss:$16 sps:$4 sm:$0xff]  }
  0x45   :  { %175 = vmatpush1.bf16.msra.mxu0 %v956_v15  ;;  %v994_v44 = vld [vmem:[#allocation7 + $0xc0] ss:$16 sps:$4 sm:$0xff]   ;;  %v997_v45 = vld [vmem:[#allocation7 + $0xc8] ss:$16 sps:$4 sm:$0xff]   ;;  %v1002_v46 = vld [vmem:[#allocation7 + $0xe4] ss:$16 sps:$4 sm:$0xff]  }
  0x46   :  { %216 = vmatpush1.bf16.msra.mxu1 %v957_v16  ;;  %652 = vmatprep.subr.bf16.mxu0 %v960_v17  ;;  %v1005_v47 = vld [vmem:[#allocation7 + $0xec] ss:$16 sps:$4 sm:$0xff]   ;;  %v1000_v48 = vld [vmem:[#allocation7 + $0xe0] ss:$16 sps:$4 sm:$0xff]   ;;  %v1003_v49 = vld [vmem:[#allocation7 + $0xe8] ss:$16 sps:$4 sm:$0xff]  }
  0x47   :  { %693 = vmatprep.subr.bf16.mxu1 %v963_v18  ;;  %v1008_v50 = vld [vmem:[#allocation7 + $0x104] ss:$16 sps:$4 sm:$0xff]   ;;  %v1011_v51 = vld [vmem:[#allocation7 + $0x10c] ss:$16 sps:$4 sm:$0xff]   ;;  %v1006_v52 = vld [vmem:[#allocation7 + $0x100] ss:$16 sps:$4 sm:$0xff]   ;;  %v254_v18 = vlaneseq }
  0x48   :  { %858 = vmatmul.mubr.msk.bf16.vlgmr.msra.gmra.mrb[0].mxu0 %vm164_vm0, %v67_v19  ;;  %v1009_v53 = vld [vmem:[#allocation7 + $0x108] ss:$16 sps:$4 sm:$0xff]   ;;  %v1014_v54 = vld [vmem:[#allocation7 + $0x124] ss:$16 sps:$4 sm:$0xff]   ;;  %v1017_v55 = vld [vmem:[#allocation7 + $0x12c] ss:$16 sps:$4 sm:$0xff]  }
  0x49   :  { %859 = vmatmul.mubr.msk.bf16.vlgmr.msra.gmra.mrb[0].mxu1 %vm164_vm0, %v67_v19  ;;  %653 = vmatpush1.bf16.msra.mxu0 %v958_v20  ;;  %v1012_v56 = vld [vmem:[#allocation7 + $0x120] ss:$16 sps:$4 sm:$0xff]   ;;  %v1015_v57 = vld [vmem:[#allocation7 + $0x128] ss:$16 sps:$4 sm:$0xff]   ;;  %v1020_v58 = vld [vmem:[#allocation7 + $0x144] ss:$16 sps:$4 sm:$0xff]  }
  0x4a   :  { %694 = vmatpush1.bf16.msra.mxu1 %v961_v21  ;;  %654 = vmatprep.subr.bf16.mxu0 %v966_v22  ;;  %v1023_v59 = vld [vmem:[#allocation7 + $0x14c] ss:$16 sps:$4 sm:$0xff]   ;;  %v1018_v60 = vld [vmem:[#allocation7 + $0x140] ss:$16 sps:$4 sm:$0xff]   ;;  %v1021_v61 = vld [vmem:[#allocation7 + $0x148] ss:$16 sps:$4 sm:$0xff]  }
  0x4b   :  { %695 = vmatprep.subr.bf16.mxu1 %v969_v23  ;;  %v1026_v62 = vld [vmem:[#allocation7 + $0x164] ss:$16 sps:$4 sm:$0xff]   ;;  %v1029_v63 = vld [vmem:[#allocation7 + $0x16c] ss:$16 sps:$4 sm:$0xff]   ;;  %v1024_v0 = vld [vmem:[#allocation7 + $0x160] ss:$16 sps:$4 sm:$0xff]  }
  0x4c   :  { %v1027_v1 = vld [vmem:[#allocation7 + $0x168] ss:$16 sps:$4 sm:$0xff]   ;;  %v1032_v2 = vld [vmem:[#allocation7 + $0x184] ss:$16 sps:$4 sm:$0xff]   ;;  %v1035_v3 = vld [vmem:[#allocation7 + $0x18c] ss:$16 sps:$4 sm:$0xff]  }
  0x4d   :  { %655 = vmatpush1.bf16.msra.mxu0 %v964_v24  ;;  %v1030_v4 = vld [vmem:[#allocation7 + $0x180] ss:$16 sps:$4 sm:$0xff]   ;;  %v1033_v5 = vld [vmem:[#allocation7 + $0x188] ss:$16 sps:$4 sm:$0xff]   ;;  %v1038_v6 = vld [vmem:[#allocation7 + $0x1a4] ss:$16 sps:$4 sm:$0xff]  }
  0x4e   :  { %696 = vmatpush1.bf16.msra.mxu1 %v967_v25  ;;  %656 = vmatprep.subr.bf16.mxu0 %v972_v26  ;;  %v1041_v7 = vld [vmem:[#allocation7 + $0x1ac] ss:$16 sps:$4 sm:$0xff]   ;;  %v1036_v8 = vld [vmem:[#allocation7 + $0x1a0] ss:$16 sps:$4 sm:$0xff]   ;;  %v1039_v9 = vld [vmem:[#allocation7 + $0x1a8] ss:$16 sps:$4 sm:$0xff]  }
  0x4f   :  { %697 = vmatprep.subr.bf16.mxu1 %v975_v27  ;;  %v1044_v10 = vld [vmem:[#allocation7 + $0x1c4] ss:$16 sps:$4 sm:$0xff]   ;;  %v1047_v11 = vld [vmem:[#allocation7 + $0x1cc] ss:$16 sps:$4 sm:$0xff]   ;;  %v1042_v12 = vld [vmem:[#allocation7 + $0x1c0] ss:$16 sps:$4 sm:$0xff]  }
  0x50   :  { %v1045_v13 = vld [vmem:[#allocation7 + $0x1c8] ss:$16 sps:$4 sm:$0xff]   ;;  %v1050_v14 = vld [vmem:[#allocation7 + $0x1e4] ss:$16 sps:$4 sm:$0xff]   ;;  %v1053_v15 = vld [vmem:[#allocation7 + $0x1ec] ss:$16 sps:$4 sm:$0xff]  }
  0x51   :  { %657 = vmatpush1.bf16.msra.mxu0 %v970_v28  ;;  %v1048_v16 = vld [vmem:[#allocation7 + $0x1e0] ss:$16 sps:$4 sm:$0xff]   ;;  %v1051_v17 = vld [vmem:[#allocation7 + $0x1e8] ss:$16 sps:$4 sm:$0xff]   ;;  %v255_v19 = vshrl.u32 %v254_v18, 7  ;;  %vm824_vm1 = vcmask 58368  }
  0x52   :  { %698 = vmatpush1.bf16.msra.mxu1 %v973_v29  ;;  %658 = vmatprep.subr.bf16.mxu0 %v978_v30  ;;  %v252_v21 = vld [vmem:[%s1264_s2] sm:$0x3] }
  0x53   :  { %699 = vmatprep.subr.bf16.mxu1 %v981_v31  ;;  %v256_v20 = vsub.s32 0, %v255_v19  ;;  %v260_v22 = vsub.s32 1, %v255_v19 }
  0x55   :  { %659 = vmatpush1.bf16.msra.mxu0 %v976_v32  ;;  %v257_v23 = vrot.slane %v252_v21, %v256_v20  ;;  %v261_v26 = vrot.slane %v252_v21, %v260_v22 }
  0x56   :  { %700 = vmatpush1.bf16.msra.mxu1 %v979_v33  ;;  %660 = vmatprep.subr.bf16.mxu0 %v984_v34 }
  0x57   :  { %701 = vmatprep.subr.bf16.mxu1 %v987_v35 }
  0x59   :  { %661 = vmatpush1.bf16.msra.mxu0 %v982_v36 }
  0x5a   :  { %702 = vmatpush1.bf16.msra.mxu1 %v985_v37  ;;  %662 = vmatprep.subr.bf16.mxu0 %v990_v38 }
  0x5b   :  { %703 = vmatprep.subr.bf16.mxu1 %v993_v39  ;;  %v1154_v39 = vmov 1966171168  }
  0x5d   :  { %663 = vmatpush1.bf16.msra.mxu0 %v988_v40  ;;  %v769_v40 = vunpack.c.l.s4 %v1154_v39 }
  0x5e   :  { %704 = vmatpush1.bf16.msra.mxu1 %v991_v41  ;;  %664 = vmatprep.subr.bf16.mxu0 %v996_v42  ;;  %v924_v41 = vld.sshfl [vmem:[%s1267_s5] sm:$0x11 pattern:$0x75316420] }
  0x5f   :  { %705 = vmatprep.subr.bf16.mxu1 %v999_v43  ;;  %v770_v42 = vunpack.c.0.s8 %v769_v40  ;;  %v767_v43 = vcombine.high %v924_v41, %v924_v41 }
  0x61   :  { %665 = vmatpush1.bf16.msra.mxu0 %v994_v44  ;;  %v773_v44 = vsub.s32 %v770_v42, %v255_v19 }
  0x62   :  { %706 = vmatpush1.bf16.msra.mxu1 %v997_v45  ;;  %666 = vmatprep.subr.bf16.mxu0 %v1002_v46 }
  0x63   :  { %707 = vmatprep.subr.bf16.mxu1 %v1005_v47  ;;  %v781_v45 = vrot.slane %v767_v43, %v773_v44  ;;  %v774_v46 = vrot.slane %v924_v41, %v773_v44  ;;  %v753_v47 = vld [vmem:[%s1268_s6] sm:$0x3] }
  0x64   :  { %756 = vperm.xlu0 %933, %v753_v47  }
  0x65   :  { %667 = vmatpush1.bf16.msra.mxu0 %v1000_v48  ;;  %v736_v48 = vld [vmem:[%s1266_s4] sm:$0x3]  ;;  %s1155_s4 = smov [#allocation8]  }
  0x66   :  { %708 = vmatpush1.bf16.msra.mxu1 %v1003_v49  ;;  %668 = vmatprep.subr.bf16.mxu0 %v1008_v50  ;;  %v741_v49 = vrot.slane %v736_v48, %v256_v20  ;;  %s832_s5 = sshll.u32 %s1155_s4, 4  ;;  %s833_s5 = int_to_ptr.vmem [resolvable:$true] %s832_s5 }
  0x67   :  { %709 = vmatprep.subr.bf16.mxu1 %v1011_v51  ;;  %s1120_s6 = scalar_lea.vmem %s833_s5, 32  ;;  %p1125_p11 = scmp.lt.s32.totalorder %s833_s5, %s833_s5 }
  0x68   :  { %p1121_p10 = scmp.ne.s32.totalorder %s833_s5, %s1120_s6  ;;  %p1126_p12 = scmp.lt.s32.totalorder %s1120_s6, %s1120_s6 }
  0x69   :  { %669 = vmatpush1.bf16.msra.mxu0 %v1006_v52  ;;  %v745_v52 = vrot.slane %v736_v48, %v260_v22 }
  0x6a   :  { %710 = vmatpush1.bf16.msra.mxu1 %v1009_v53  ;;  %670 = vmatprep.subr.bf16.mxu0 %v1014_v54  ;;  %p1127_p13 = por %p1126_p12, %p1125_p11 }
  0x6b   :  { %711 = vmatprep.subr.bf16.mxu1 %v1017_v55 }
  0x6c   :  { %p1128_p0 = pnand %p1127_p13, %p1121_p10 }
  0x6d   :  { %671 = vmatpush1.bf16.msra.mxu0 %v1012_v56 }
  0x6e   :  { %712 = vmatpush1.bf16.msra.mxu1 %v1015_v57  ;;  %672 = vmatprep.subr.bf16.mxu0 %v1020_v58 }
  0x6f   :  { %713 = vmatprep.subr.bf16.mxu1 %v1023_v59 }
  0x71   :  { %673 = vmatpush1.bf16.msra.mxu0 %v1018_v60 }
  0x72   :  { %714 = vmatpush1.bf16.msra.mxu1 %v1021_v61  ;;  %674 = vmatprep.subr.bf16.mxu0 %v1026_v62 }
  0x73   :  { %715 = vmatprep.subr.bf16.mxu1 %v1029_v63 }
  0x75   :  { %675 = vmatpush1.bf16.msra.mxu0 %v1024_v0 }
  0x76   :  { %716 = vmatpush1.bf16.msra.mxu1 %v1027_v1  ;;  %676 = vmatprep.subr.bf16.mxu0 %v1032_v2 }
  0x77   :  { %717 = vmatprep.subr.bf16.mxu1 %v1035_v3 }
  0x79   :  { %677 = vmatpush1.bf16.msra.mxu0 %v1030_v4 }
  0x7a   :  { %718 = vmatpush1.bf16.msra.mxu1 %v1033_v5  ;;  %678 = vmatprep.subr.bf16.mxu0 %v1038_v6 }
  0x7b   :  { %719 = vmatprep.subr.bf16.mxu1 %v1041_v7 }
  0x7d   :  { %679 = vmatpush1.bf16.msra.mxu0 %v1036_v8 }
  0x7e   :  { %720 = vmatpush1.bf16.msra.mxu1 %v1039_v9  ;;  %680 = vmatprep.subr.bf16.mxu0 %v1044_v10 }
  0x7f   :  { %721 = vmatprep.subr.bf16.mxu1 %v1047_v11 }
  0x81   :  { %681 = vmatpush1.bf16.msra.mxu0 %v1042_v12 }
  0x82   :  { %722 = vmatpush1.bf16.msra.mxu1 %v1045_v13  ;;  %682 = vmatprep.subr.bf16.mxu0 %v1050_v14 }
  0x83   :  { %723 = vmatprep.subr.bf16.mxu1 %v1053_v15 }
  0x85   :  { %683 = vmatpush1.bf16.msra.mxu0 %v1048_v16 }
  0x86   :  { %724 = vmatpush1.bf16.msra.mxu1 %v1051_v17 }
  0xe3   :  { %v757_v1 = vpop.permute.xlu0 %756 }
 0x11b   :  { %v202_v24 = vpop.f32.mrb[0].mxu0 }
 0x11c   :  { %v243_v25 = vpop.f32.mrb[0].mxu1  ;;  %v204_v28 = vpop.f32.mrb[1].mxu0 }
 0x11d   :  { %v250_v27 = vmax.f32 %v202_v24, %v243_v25  ;;  %v245_v29 = vpop.f32.mrb[1].mxu1  ;;  %v206_v31 = vpop.f32.mrb[2].mxu0 }
 0x11e   :  { %v251_v30 = vmax.f32 %v204_v28, %v245_v29  ;;  %v247_v32 = vpop.f32.mrb[2].mxu1  ;;  %v207_v34 = vpop.f32.mrb[3].mxu0 }
 0x11f   :  { %v264_v33 = vadd.f32 %v257_v23, %v250_v27  ;;  %v248_v35 = vpop.f32.mrb[3].mxu1 }
 0x120   :  { %v265_v36 = vadd.f32 %v261_v26, %v251_v30 }
 0x121   :  { %v266_v38 = vpack.c.bf16 %v264_v33, %v264_v33 }
 0x122   :  { %v267_v37 = vpack.c.bf16 %v265_v36, %v265_v36 }
 0x124   :  { %684 = vmatprep.mubr.bf16.mxu0 %v267_v37  ;;  %725 = vmatprep.mubr.bf16.mxu1 %v267_v37 }
 0x125   :  { %685 = vmatmul.mubr.bf16.vlgmr.msra.gmra.mrb[4].mxu0 %v266_v38  ;;  %726 = vmatmul.mubr.bf16.vlgmr.msra.gmra.mrb[4].mxu1 %v266_v38 }
 0x126   :  { %816 = vmatprep.mubr.bf16.mxu0 %v781_v45 }
 0x1f8   :  { %v686_v50 = vpop.f32.mrb[4].mxu0  ;;  %v727_v51 = vpop.f32.mrb[4].mxu1 }
 0x1f9   :  { %v734_v53 = vmax.f32 %v686_v50, %v727_v51  ;;  %v688_v54 = vpop.f32.mrb[5].mxu0  ;;  %v729_v55 = vpop.f32.mrb[5].mxu1 }
 0x1fa   :  { %v735_v56 = vmax.f32 %v688_v54, %v729_v55  ;;  %v690_v57 = vpop.f32.mrb[6].mxu0  ;;  %v731_v58 = vpop.f32.mrb[6].mxu1 }
 0x1fb   :  { %v748_v59 = vadd.f32 %v741_v49, %v734_v53  ;;  %v691_v60 = vpop.f32.mrb[7].mxu0  ;;  %v732_v61 = vpop.f32.mrb[7].mxu1 }
 0x1fc   :  { %v749_v62 = vadd.f32 %v745_v52, %v735_v56 }
 0x1fd   :  { %v750_v0 = vpack.c.bf16 %v748_v59, %v748_v59 }
 0x1fe   :  { %v751_v63 = vpack.c.bf16 %v749_v62, %v749_v62 }
 0x200   :  { %784 = vmatprep.subr.bf16.mxu0 %v751_v63 }
 0x201   :  { %785 = vmatpush1.bf16.xpose.msra.mxu0 %v750_v0 }
 0x208   :  { %817 = vmatmul.mubr.bf16.vlgmr.msra.gmra.mrb[8].mxu0 %v774_v46 }
 0x2db   :  { %v818_v2 = vpop.f32.mrb[8].mxu0 }
 0x2dc   :  { %v819_v3 = vadd.f32 %v818_v2, %v757_v1  ;;  %v820_v4 = vpop.f32.mrb[9].mxu0 }
 0x2dd   :  { %v821_v5 = vpop.f32.mrb[10].mxu0 }
 0x2de   :  { %v822_v6 = vpop.f32.mrb[11].mxu0  ;;  %825 = vst.msk [vmem:[#allocation8] sm:$0x3] %vm824_vm1, %v819_v3 }
 0x2df   :  { %1131 = shalt.err (!%p1128_p0)
}
 0x2e0   :  { %s1132_s22 = scalar_lea.hbm %s1269_s7, 32 }
 0x2e1   :  { %p1133_p1 = scmp.ne.s32.totalorder %s1269_s7, %s1132_s22  ;;  %p1136_p2 = scmp.lt.u32.totalorder %s1132_s22, %s1269_s7 }
 0x2e3   :  { %p1138_p3 = pnand %p1136_p2, %p1133_p1 }
 0x2e5   :  { %1141 = shalt.err (!%p1138_p3)
}
 0x2e6   :  { %835 = dma.vmem_to_hbm [thread:$0]  %s833_s5, 32, %s1269_s7, [#allocation4]  }
 0x2e7   :  { %1146 = dma.done.wait [#allocation4], 32  }
 0x2e8   :  { %1147 = vsyncadd [#allocation4], 4294967264 }
 0x2e9   :  { %839 = vsyncpa [#allocation3], 1 }
 0x2ea   :  { %840 = vsyncpa [#allocation6], 1 }
 0x2eb   :  { %841 = vsyncpa [#allocation4], 1 }

</bundles_post_ra>
